<compile_context>
chip_gen: v6e
topology: v6e:2x2x1
jax: 0.10.0
libtpu: 0.0.40
codegen_flags: <defaults>
</compile_context>

<pallas_src>
import jax
import jax.numpy as jnp
from jax.experimental import pallas as pl
from jax.experimental.pallas import tpu as pltpu


def _quant_fwd_kernel(scale_ref, x_ref, o_ref):
    scale = scale_ref[0, 0]                           # f32 scalar in SMEM
    x = x_ref[...].astype(jnp.float32) / scale        # true divide: matches torch x / scale
    o_ref[...] = jnp.round(x).astype(o_ref.dtype)     # round-half-to-even == torch.round


def _target_block_bytes():
    # v7x HBM (~3.2 TB/s per TC) makes the ~0.35 us per-step overhead visible at small
    # blocks; use bigger blocks there.  Detection is best-effort only.
    try:
        kind = jax.devices()[0].device_kind.lower()
    except Exception:
        kind = ""
    return (8 << 20) if "v7" in kind else (4 << 20)


def _run_quant_kernel(x2d, scale_11):
    rows, cols = x2d.shape
    itemsize = jnp.dtype(x2d.dtype).itemsize
    row_align = max(8, 32 // itemsize)                # sublane pack: 8 f32, 16 bf16, 32 i8

    # bytes-based, dtype-aware block sizing
    target_bytes = _target_block_bytes()
    max_rows = (target_bytes // (cols * itemsize)) // row_align * row_align
    max_rows = max(row_align, max_rows)

    if rows > max_rows:
        block_rows = max_rows
    elif rows >= 2 * row_align:
        # split into >= 2 blocks so both v7x TensorCores get work
        half = pl.cdiv(rows, 2)
        block_rows = ((half + row_align - 1) // row_align) * row_align
    else:
        block_rows = rows                             # single full-extent block (legal)
    grid = (pl.cdiv(rows, block_rows),)

    # NOTE: input_output_aliases={1: 0} would halve peak HBM footprint, but requires
    # donating x; skipped so the caller's x stays valid after the call.
    return pl.pallas_call(
        _quant_fwd_kernel,
        out_shape=jax.ShapeDtypeStruct((rows, cols), x2d.dtype),
        grid=grid,
        in_specs=[
            pl.BlockSpec(memory_space=pltpu.SMEM),                # scale scalar
            pl.BlockSpec((block_rows, cols), lambda i: (i, 0)),   # x tile
        ],
        out_specs=pl.BlockSpec((block_rows, cols), lambda i: (i, 0)),
        compiler_params=pltpu.CompilerParams(
            dimension_semantics=("parallel",),
            vmem_limit_bytes=40 << 20,   # in+out double-buffered block footprint <= 32 MiB
        ),
    )(scale_11, x2d)


def soft_and_hard_quant(x, scale, alpha):
    """Forward of soft_and_hard_Quant: round(x / scale). alpha only affects gradients."""
    del alpha  # forward value is independent of alpha (straight-through estimator)

    orig_shape = x.shape
    orig_dtype = x.dtype
    total = x.size
    scale_11 = jnp.asarray(scale, jnp.float32).reshape(1, 1)

    # Pick a lane-dense 2-D view: cols a multiple of 128 AND rows >= 8 (no pad/copy).
    cols = None
    for c in (2048, 1024, 4096, 512, 256, 128):
        if total % c == 0 and total // c >= 8:
            cols = c
            break

    flat = x.reshape(-1)
    if cols is not None:
        out2d = _run_quant_kernel(flat.reshape(total // cols, cols), scale_11)
        return out2d.reshape(orig_shape)

    # Fallback (size not a multiple of 128, or too small): run the lane-aligned bulk
    # through the kernel and only the tiny remainder through plain XLA — no full-array pad.
    cols = 128
    rows = total // cols
    main_n = rows * cols
    if rows >= 8:
        main = _run_quant_kernel(flat[:main_n].reshape(rows, cols), scale_11)
        tail = jnp.round(flat[main_n:].astype(jnp.float32) / scale_11[0, 0])
        out = jnp.concatenate([main.reshape(-1), tail.astype(orig_dtype)])
    else:
        # Tensor too small for a single (8, 128) tile -> pure XLA elementwise.
        out = jnp.round(flat.astype(jnp.float32) / scale_11[0, 0]).astype(orig_dtype)
    return out.reshape(orig_shape)


def _reference(x, scale, alpha):
    # Bit-for-bit transcription of the PyTorch forward expression.
    x = x / scale
    m = jnp.floor(x) + 0.5
    r = x - m
    z = jnp.tanh(alpha / 2.0) * 2.0
    soft_q = m + jnp.tanh(alpha * r) / z
    hard_q = jnp.round(x)
    return soft_q + (hard_q - soft_q)


if __name__ == "__main__":
    key = jax.random.PRNGKey(0)
    x = jax.random.normal(key, (2, 4, 16, 16), dtype=jnp.float32) * 3.0
    scale = 0.25
    alpha = 5.0

    out = jax.block_until_ready(soft_and_hard_quant(x, scale, alpha))

    ref = _reference(x, jnp.float32(scale), jnp.float32(alpha))
    assert out.shape == x.shape and out.dtype == x.dtype
    assert jnp.allclose(out, ref, atol=1e-5, rtol=1e-5)

    print("KERNEL_OK")
</pallas_src>

<mosaic_0001>
module attributes {stable_mosaic.version = 11 : i64} {
  func.func @_quant_fwd_kernel(%arg0: i32, %arg1: memref<1x1xf32, #tpu.memory_space<smem>>, %arg2: memref<8x256xf32, #tpu.memory_space<vmem>>, %arg3: memref<8x256xf32, #tpu.memory_space<vmem>>) attributes {dimension_semantics = [#tpu.dimension_semantics<parallel>], iteration_bounds = array<i64: 1>, scalar_prefetch = 0 : i64, scratch_operands = 0 : i64, tpu.core_type = #tpu.core_type<tc>, window_params = [{transform_indices = @transform_0, window_bounds = array<i64: 1, 1>}, {transform_indices = @transform_1, window_bounds = array<i64: 8, 256>}, {transform_indices = @transform_2, window_bounds = array<i64: 8, 256>}]} {
    %c0 = arith.constant 0 : index
    %c0_0 = arith.constant 0 : index
    %0 = memref.load %arg1[%c0, %c0_0] : memref<1x1xf32, #tpu.memory_space<smem>>
    %c0_1 = arith.constant 0 : index
    %c0_2 = arith.constant 0 : index
    %1 = vector.load %arg2[%c0_1, %c0_2] : memref<8x256xf32, #tpu.memory_space<vmem>>, vector<8x256xf32>
    %2 = vector.broadcast %0 : f32 to vector<8x256xf32>
    %3 = arith.divf %1, %2 : vector<8x256xf32>
    %4 = math.roundeven %3 : vector<8x256xf32>
    %c0_3 = arith.constant 0 : index
    %c0_4 = arith.constant 0 : index
    %5 = vector.load %arg3[%c0_3, %c0_4] : memref<8x256xf32, #tpu.memory_space<vmem>>, vector<8x256xf32>
    tpu.vector_store %arg3[%c0_3, %c0_4], %4 {strides = array<i32>} : memref<8x256xf32, #tpu.memory_space<vmem>>, vector<8x256xf32>,
    return
  }
  func.func @transform_0(%arg0: i32) -> (i32, i32) {
    %c0_i32 = arith.constant 0 : i32
    %c0_i32_0 = arith.constant 0 : i32
    %c0_i32_1 = arith.constant 0 : i32
    return %c0_i32, %c0_i32_0 : i32, i32
  }
  func.func @transform_1(%arg0: i32) -> (i32, i32) {
    %c0_i32 = arith.constant 0 : i32
    %c0_i32_0 = arith.constant 0 : i32
    return %arg0, %c0_i32 : i32, i32
  }
  func.func @transform_2(%arg0: i32) -> (i32, i32) {
    %c0_i32 = arith.constant 0 : i32
    %c0_i32_0 = arith.constant 0 : i32
    return %arg0, %c0_i32 : i32, i32
  }
}

</mosaic_0001>

<bundles_post_ra>
// kernel: tpu_custom_call.1
= control target key start
LH: loop header
LB: loop body
LE: loop exit
PB: predicated region body
PF: predicated region fallthrough
CT: control target
= control target key end

     0   :  { %8 = vsyncpa [#allocation4], 0  ;;  %s141_s0 = inlined_call_operand.<no memory space> [shape: f32[1,1], index: 0, kind: input, shape index: {}]   ;;  %s142_s1 = inlined_call_operand.hbm [shape: f32[8,256], index: 1, kind: input, shape index: {}]   ;;  %s143_s2 = inlined_call_operand.hbm [shape: f32[8,256], index: 2, kind: output, shape index: {}]  }
   0x1   :  { %9 = vsyncpa [#allocation5], 0  ;;  %s115_s9 = smov [#allocation3]  }
   0x2   :  { %s18_s10 = sshll.u32 %s115_s9, 4  ;;  %s19_s10 = int_to_ptr.vmem [resolvable:$true] %s18_s10 }
   0x3   :  { %s79_s11 = scalar_lea.vmem %s19_s10, 256  ;;  %p84_p1 = scmp.lt.s32.totalorder %s19_s10, %s19_s10 }
   0x4   :  { %p80_p0 = scmp.ne.s32.totalorder %s19_s10, %s79_s11  ;;  %p85_p2 = scmp.lt.s32.totalorder %s79_s11, %s79_s11 }
   0x6   :  { %p86_p3 = por %p85_p2, %p84_p1 }
   0x8   :  { %p87_p4 = pnand %p86_p3, %p80_p0 }
   0xa   :  { %90 = shalt.err (!%p87_p4)
}
   0xb   :  { %21 = dma.hbm_to_vmem [thread:$0]  %s142_s1, 256, %s19_s10, [#allocation4]  }
   0xc   :  { %111 = dma.done.wait [#allocation4], 256  }
   0xd   :  { %112 = vsyncadd [#allocation4], 4294967040  ;;  %v28_v0 = vstv %s141_s0  ;;  %v26_v1 = vld [vmem:[#allocation3] sm:$0xff]  ;;  %v27_v2 = vld [vmem:[#allocation3 + $0x8] sm:$0xff]  ;;  %s116_s1 = smov [#allocation6]  }
   0xe   :  { %69 = vrcp.f32 %v28_v0  ;;  %s42_s16 = sshll.u32 %s116_s1, 4  ;;  %s43_s16 = int_to_ptr.vmem [resolvable:$true] %s42_s16 }
   0xf   :  { %s91_s0 = scalar_lea.vmem %s43_s16, 256  ;;  %p96_p6 = scmp.lt.s32.totalorder %s43_s16, %s43_s16 }
  0x10   :  { %p92_p5 = scmp.ne.s32.totalorder %s43_s16, %s91_s0  ;;  %p97_p7 = scmp.lt.s32.totalorder %s91_s0, %s91_s0 }
  0x12   :  { %p98_p8 = por %p97_p7, %p96_p6 }
  0x14   :  { %p99_p9 = pnand %p98_p8, %p92_p5 }
  0x1b   :  { %v70_v3 = vpop.eup %69 }
  0x1c   :  { %v30_v4 = vmul.f32 %v70_v3, %v26_v1  ;;  %v31_v5 = vmul.f32 %v70_v3, %v27_v2 }
  0x1e   :  { %v53_v6 = vcvt.f32.s32 %v30_v4  ;;  %v51_v7 = vand.u32 2147483647, %v30_v4  ;;  %v61_v8 = vcvt.f32.s32 %v31_v5  ;;  %v56_v10 = vand.u32 2147483648, %v30_v4 }
  0x1f   :  { %v59_v11 = vand.u32 2147483647, %v31_v5  ;;  %v64_v13 = vand.u32 2147483648, %v31_v5 }
  0x20   :  { %v54_v9 = vcvt.s32.f32 %v53_v6  ;;  %v62_v12 = vcvt.s32.f32 %v61_v8  ;;  %vm52_vm0 = vcmp.lt.f32.partialorder %v51_v7, 8388608.0 }
  0x21   :  { %vm60_vm1 = vcmp.lt.f32.partialorder %v59_v11, 8388608.0 }
  0x22   :  { %v55_v14 = vand.u32 2147483647, %v54_v9  ;;  %v63_v15 = vand.u32 2147483647, %v62_v12 }
  0x24   :  { %v57_v16 = vor.u32 %v56_v10, %v55_v14  ;;  %v65_v17 = vor.u32 %v64_v13, %v63_v15 }
  0x26   :  { %v58_v18 = vsel %vm52_vm0, %v57_v16, %v30_v4  ;;  %v66_v19 = vsel %vm60_vm1, %v65_v17, %v31_v5 }
  0x27   :  { %34 = vst [vmem:[#allocation6] sm:$0xff] %v58_v18  ;;  %35 = vst [vmem:[#allocation6 + $0x8] sm:$0xff] %v66_v19 }
  0x28   :  { %102 = shalt.err (!%p99_p9)
}
  0x29   :  { %45 = dma.vmem_to_hbm [thread:$0]  %s43_s16, 256, %s143_s2, [#allocation5]  }
  0x2a   :  { %113 = dma.done.wait [#allocation5], 256  }
  0x2b   :  { %114 = vsyncadd [#allocation5], 4294967040 }
  0x2c   :  { %49 = vsyncpa [#allocation4], 1 }
  0x2d   :  { %50 = vsyncpa [#allocation5], 1 }

</bundles_post_ra>
